<compile_context>
chip_gen: v7x
topology: tpu7x:2x2x1
jax: 0.10.0
libtpu: 0.0.40
codegen_flags: <defaults>
</compile_context>

<pallas_src>
import jax
import jax.numpy as jnp
from jax import lax
from jax.experimental import pallas as pl
from jax.experimental.pallas import tpu as pltpu


def selective_ssm_kernel(x_ref, a_ref, b_ref, c_ref, dt_ref, w_ref, bias_ref,
                         out_ref, h_carry, y_tail, u_buf, h_buf, y_buf):
    """One (batch block, time block) grid step.

    x_ref / out_ref: (b_blk, t_blk, D) batch-major blocks of the (B, L, D)
    arrays.  Inside the kernel everything is time-major: row r = t*b_blk + b.
    """
    b_blk, t_blk, D = x_ref.shape
    d_state = a_ref.shape[0]
    rows = t_blk * b_blk

    # Reset the carried state at the first time block of each batch block.
    @pl.when(pl.program_id(1) == 0)
    def _():
        h_carry[...] = jnp.zeros_like(h_carry)
        y_tail[...] = jnp.zeros_like(y_tail)

    # ---- Hoisted: u = x @ B over the whole block (one MXU op, M = rows). ----
    x_flat = x_ref[...].reshape(rows, D)                        # batch-major rows
    u_bm = jnp.dot(x_flat, b_ref[...], preferred_element_type=jnp.float32)
    # (b, t, s) -> (t, b, s): single in-VMEM relayout of the narrow u slab,
    # done once per block, outside the serial chain.
    u_tm = pltpu.einshape("bts->tbs", u_bm.reshape(b_blk, t_blk, d_state))
    u_buf[...] = u_tm.reshape(rows, d_state)

    # ---- Sequential part: only the tiny h recurrence (latency chain). -------
    A = a_ref[...].astype(jnp.float32)

    def step(t, h):
        off = pl.multiple_of(t * b_blk, 8)                      # sublane-aligned
        u_t = u_buf[pl.ds(off, b_blk), :]
        h = jnp.tanh(jnp.dot(h, A, preferred_element_type=jnp.float32) + u_t)
        h_buf[pl.ds(off, b_blk), :] = h
        return h

    h_last = lax.fori_loop(0, t_blk, step, h_carry[...],
                           unroll=min(8, t_blk))
    h_carry[...] = h_last

    # ---- Hoisted: y = (H @ C) * sigmoid(dt) over the whole block. -----------
    dt_sig = jax.nn.sigmoid(dt_ref[...])                        # (1, D) f32
    y = jnp.dot(h_buf[...].astype(c_ref.dtype), c_ref[...],
                preferred_element_type=jnp.float32) * dt_sig    # (rows, D) f32

    # ---- Causal conv (kernel=3) as three accumulated dots on shifted views. -
    # y_buf rows are time-major y at times [t0-2, t0-1, t0, ..., t0+t_blk-2].
    y_buf[0:2 * b_blk, :] = y_tail[...]                         # old 2-step halo
    y_buf[2 * b_blk:, :] = y[0:(t_blk - 1) * b_blk, :]
    y_tail[...] = y[(t_blk - 2) * b_blk:, :]                    # carry last 2 steps

    wdt = w_ref.dtype
    out = (jnp.dot(y.astype(wdt), w_ref[2],                     # y[t]   @ W2 (live)
                   preferred_element_type=jnp.float32)
           + jnp.dot(y_buf[b_blk:b_blk + rows, :].astype(wdt),  # y[t-1] @ W1
                     w_ref[1], preferred_element_type=jnp.float32)
           + jnp.dot(y_buf[0:rows, :].astype(wdt),              # y[t-2] @ W0
                     w_ref[0], preferred_element_type=jnp.float32)
           + bias_ref[...])

    # (t, b, D) -> (b, t, D): one relayout, then one dense batch-major store.
    out_ref[...] = pltpu.einshape("tbd->btd", out.reshape(t_blk, b_blk, D))


def _pad_tile_bytes(shape, itemsize=4):
    """Bytes of `shape` padded to the (8, 128) tile in its last two dims."""
    s = list(shape)
    s[-1] = -(-s[-1] // 128) * 128
    if len(s) >= 2:
        s[-2] = -(-s[-2] // 8) * 8
    n = itemsize
    for d in s:
        n *= d
    return n


def selective_ssm(x, A, Bm, C, dt, conv_w, conv_b, *,
                  t_blk=None, b_blk=None, compute_dtype=jnp.float32):
    """x: (B, L, D) float32 -> (B, L, D) float32 (PyTorch SelectiveSSM.forward)."""
    Bsz, L, D = x.shape
    d_state = A.shape[0]

    # Batch blocking: b_blk must be a multiple of 8 so per-timestep slices are
    # sublane-aligned; batch is zero-padded up to a multiple of b_blk.
    # On v7x pick b_blk <= padded_B // 2 so nb >= 2 feeds both TensorCores.
    if b_blk is None:
        b_blk = 8
    assert b_blk % 8 == 0, "b_blk must be a multiple of 8"
    B_pad = -(-Bsz // b_blk) * b_blk
    nb = B_pad // b_blk

    # Time blocking: aim for rows = t_blk*b_blk in the 512-2048 range; t_blk
    # must divide L and be a multiple of 8 (or span all of L).
    if t_blk is None:
        t_blk = L
        for cand in range(min(L, max(8, 2048 // b_blk)), 7, -1):
            if L % cand == 0 and cand % 8 == 0:
                t_blk = cand
                break
    assert L % t_blk == 0 and t_blk >= 2
    assert t_blk % 8 == 0 or t_blk == L, "t_blk must be a multiple of 8"
    nt = L // t_blk
    rows = t_blk * b_blk

    cdt = compute_dtype
    x_p = x.astype(cdt)
    if B_pad != Bsz:
        x_p = jnp.pad(x_p, ((0, B_pad - Bsz), (0, 0), (0, 0)))

    # Conv weights as three stacked (D, D) right-multiply blocks:
    # out[t] = y[t-2] @ W[0] + y[t-1] @ W[1] + y[t] @ W[2] + bias.
    W = jnp.stack([conv_w[:, :, 0].T, conv_w[:, :, 1].T, conv_w[:, :, 2].T],
                  axis=0).astype(cdt)                           # (3, D, D)

    # VMEM budget: double-buffered blocks + params + scratch, with headroom,
    # clamped under this generation's real per-core VMEM (128 MiB v5e/v6e,
    # 64 MiB v7x) so oversized t_blk fails loudly instead of thrashing.
    isz = jnp.dtype(cdt).itemsize
    blk_arrays = [((b_blk, t_blk, D), isz), ((b_blk, t_blk, D), 4),
                  ((d_state, d_state), 4), ((D, d_state), isz),
                  ((d_state, D), isz), ((1, D), 4), ((3, D, D), isz),
                  ((1, D), 4)]
    scratch_arrays = [((b_blk, d_state), 4), ((2 * b_blk, D), 4),
                      ((rows, d_state), 4), ((rows, d_state), 4),
                      (((t_blk + 1) * b_blk, D), 4)]
    vmem_need = (2 * sum(_pad_tile_bytes(s, i) for s, i in blk_arrays)
                 + sum(_pad_tile_bytes(s, i) for s, i in scratch_arrays))
    try:
        vmem_cap = int(pltpu.get_tpu_info().vmem_capacity_bytes)
    except Exception:
        vmem_cap = 64 << 20
    vmem_limit = int(min(max(4 * vmem_need, 16 << 20), int(vmem_cap * 0.85)))

    flops = 2 * B_pad * L * (D * d_state            # x @ B
                             + d_state * d_state    # h @ A
                             + d_state * D          # H @ C
                             + 3 * D * D)           # causal conv (3 taps)
    cost = pl.CostEstimate(
        flops=flops,
        transcendentals=B_pad * L * d_state + nb * nt * D,
        bytes_accessed=(isz * B_pad * L * D + 4 * B_pad * L * D
                        + isz * (2 * D * d_state + 3 * D * D)
                        + 4 * (d_state * d_state + 2 * D)))

    out_p = pl.pallas_call(
        selective_ssm_kernel,
        out_shape=jax.ShapeDtypeStruct((B_pad, L, D), jnp.float32),
        grid=(nb, nt),
        in_specs=[
            pl.BlockSpec((b_blk, t_blk, D), lambda b, t: (b, t, 0)),    # x
            pl.BlockSpec((d_state, d_state), lambda b, t: (0, 0)),      # A
            pl.BlockSpec((D, d_state), lambda b, t: (0, 0)),            # B
            pl.BlockSpec((d_state, D), lambda b, t: (0, 0)),            # C
            pl.BlockSpec((1, D), lambda b, t: (0, 0)),                  # dt
            pl.BlockSpec((3, D, D), lambda b, t: (0, 0, 0)),            # conv W
            pl.BlockSpec((1, D), lambda b, t: (0, 0)),                  # conv bias
        ],
        out_specs=pl.BlockSpec((b_blk, t_blk, D), lambda b, t: (b, t, 0)),
        scratch_shapes=[
            pltpu.VMEM((b_blk, d_state), jnp.float32),                  # h carry
            pltpu.VMEM((2 * b_blk, D), jnp.float32),                    # y tail carry
            pltpu.VMEM((rows, d_state), jnp.float32),                   # u (time-major)
            pltpu.VMEM((rows, d_state), jnp.float32),                   # H (time-major)
            pltpu.VMEM(((t_blk + 1) * b_blk, D), jnp.float32),          # y + 2-step halo
        ],
        compiler_params=pltpu.CompilerParams(
            dimension_semantics=("parallel", "arbitrary"),
            vmem_limit_bytes=vmem_limit),
        cost_estimate=cost,
    )(x_p, A.astype(jnp.float32), Bm.astype(cdt), C.astype(cdt),
      dt.reshape(1, D).astype(jnp.float32), W,
      conv_b.reshape(1, D).astype(jnp.float32))

    return out_p[:Bsz]


def selective_ssm_reference(x, A, Bm, C, dt, conv_w, conv_b):
    """Pure-JAX reference mirroring the PyTorch forward (eval mode)."""
    Bsz, L, D = x.shape
    d_state = A.shape[0]
    h = jnp.zeros((Bsz, d_state), jnp.float32)
    ys = []
    for t in range(L):
        h = jnp.tanh(h @ A + x[:, t, :] @ Bm)
        ys.append(h @ C)
    y = jnp.stack(ys, axis=1) * jax.nn.sigmoid(dt)[None, None, :]
    y_pad = jnp.pad(y, ((0, 0), (2, 0), (0, 0)))
    out = jnp.zeros((Bsz, L, D), jnp.float32)
    for k in range(3):
        out = out + y_pad[:, k:k + L, :] @ conv_w[:, :, k].T
    return out + conv_b[None, None, :]


if __name__ == "__main__":
    d_model, d_state = 32, 16
    batch, seq = 2, 16

    key = jax.random.PRNGKey(0)
    kx, kA, kB, kC, kdt, kw, kb = jax.random.split(key, 7)

    x = jax.random.normal(kx, (batch, seq, d_model), jnp.float32)
    A = jax.random.normal(kA, (d_state, d_state), jnp.float32)
    Bm = jax.random.normal(kB, (d_model, d_state), jnp.float32)
    C = jax.random.normal(kC, (d_state, d_model), jnp.float32)
    dt = jax.random.normal(kdt, (d_model,), jnp.float32)
    conv_w = jax.random.normal(kw, (d_model, d_model, 3), jnp.float32) * 0.1
    conv_b = jax.random.normal(kb, (d_model,), jnp.float32) * 0.1

    # t_blk=8 -> grid=(1, 2): exercises the cross-block h / conv-halo carries
    # plus the batch zero-padding path (batch=2 -> b_blk=8).
    out = selective_ssm(x, A, Bm, C, dt, conv_w, conv_b, t_blk=8)
    out = jax.block_until_ready(out)

    ref = selective_ssm_reference(x, A, Bm, C, dt, conv_w, conv_b)
    assert out.shape == (batch, seq, d_model)
    assert jnp.allclose(out, ref, atol=1e-4, rtol=1e-4), "mismatch vs reference"

    print("KERNEL_OK")
</pallas_src>

<mosaic_0001>
module attributes {stable_mosaic.version = 11 : i64} {
  func.func @selective_ssm_kernel(%arg0: i32, %arg1: i32, %arg2: memref<8x8x32xf32, #tpu.memory_space<vmem>>, %arg3: memref<16x16xf32, #tpu.memory_space<vmem>>, %arg4: memref<32x16xf32, #tpu.memory_space<vmem>>, %arg5: memref<16x32xf32, #tpu.memory_space<vmem>>, %arg6: memref<1x32xf32, #tpu.memory_space<vmem>>, %arg7: memref<3x32x32xf32, #tpu.memory_space<vmem>>, %arg8: memref<1x32xf32, #tpu.memory_space<vmem>>, %arg9: memref<8x8x32xf32, #tpu.memory_space<vmem>>, %arg10: memref<8x16xf32, #tpu.memory_space<vmem>>, %arg11: memref<16x32xf32, #tpu.memory_space<vmem>>, %arg12: memref<64x16xf32, #tpu.memory_space<vmem>>, %arg13: memref<64x16xf32, #tpu.memory_space<vmem>>, %arg14: memref<72x32xf32, #tpu.memory_space<vmem>>) attributes {dimension_semantics = [#tpu.dimension_semantics<parallel>, #tpu.dimension_semantics<arbitrary>], iteration_bounds = array<i64: 1, 2>, scalar_prefetch = 0 : i64, scratch_operands = 5 : i64, tpu.core_type = #tpu.core_type<tc>, window_params = [{transform_indices = @transform_0, window_bounds = array<i64: 8, 8, 32>}, {pipeline_mode = #tpu.pipeline_mode<synchronous>, transform_indices = @transform_1, window_bounds = array<i64: 16, 16>}, {pipeline_mode = #tpu.pipeline_mode<synchronous>, transform_indices = @transform_2, window_bounds = array<i64: 32, 16>}, {pipeline_mode = #tpu.pipeline_mode<synchronous>, transform_indices = @transform_3, window_bounds = array<i64: 16, 32>}, {pipeline_mode = #tpu.pipeline_mode<synchronous>, transform_indices = @transform_4, window_bounds = array<i64: 1, 32>}, {pipeline_mode = #tpu.pipeline_mode<synchronous>, transform_indices = @transform_5, window_bounds = array<i64: 3, 32, 32>}, {pipeline_mode = #tpu.pipeline_mode<synchronous>, transform_indices = @transform_6, window_bounds = array<i64: 1, 32>}, {transform_indices = @transform_7, window_bounds = array<i64: 8, 8, 32>}]} {
    %c0_i32 = arith.constant 0 : i32
    %0 = arith.cmpi eq, %arg1, %c0_i32 : i32
    %1 = arith.extui %0 : i1 to i32
    %c0_i32_0 = arith.constant 0 : i32
    %2 = arith.cmpi ne, %1, %c0_i32_0 : i32
    scf.if %2 {
      %cst_79 = arith.constant 0.000000e+00 : f32
      %122 = vector.broadcast %cst_79 : f32 to vector<8x16xf32>
      %c0_80 = arith.constant 0 : index
      %c0_81 = arith.constant 0 : index
      %123 = vector.load %arg10[%c0_80, %c0_81] : memref<8x16xf32, #tpu.memory_space<vmem>>, vector<8x16xf32>
      tpu.vector_store %arg10[%c0_80, %c0_81], %122 {strides = array<i32>} : memref<8x16xf32, #tpu.memory_space<vmem>>, vector<8x16xf32>,
      %cst_82 = arith.constant 0.000000e+00 : f32
      %124 = vector.broadcast %cst_82 : f32 to vector<16x32xf32>
      %c0_83 = arith.constant 0 : index
      %c0_84 = arith.constant 0 : index
      %125 = vector.load %arg11[%c0_83, %c0_84] : memref<16x32xf32, #tpu.memory_space<vmem>>, vector<16x32xf32>
      tpu.vector_store %arg11[%c0_83, %c0_84], %124 {strides = array<i32>} : memref<16x32xf32, #tpu.memory_space<vmem>>, vector<16x32xf32>,
    } else {
    }
    %c0 = arith.constant 0 : index
    %c0_1 = arith.constant 0 : index
    %c0_2 = arith.constant 0 : index
    %3 = vector.load %arg2[%c0, %c0_1, %c0_2] : memref<8x8x32xf32, #tpu.memory_space<vmem>>, vector<8x8x32xf32>
    %4 = vector.shape_cast %3 : vector<8x8x32xf32> to vector<64x32xf32>
    %c0_3 = arith.constant 0 : index
    %c0_4 = arith.constant 0 : index
    %5 = vector.load %arg4[%c0_3, %c0_4] : memref<32x16xf32, #tpu.memory_space<vmem>>, vector<32x16xf32>
    %cst = arith.constant dense<0.000000e+00> : vector<64x16xf32>
    %6 = tpu.matmul %4, %5, %cst {dimension_numbers = #tpu.dot_dimension_numbers<[1], [0], [0], [1], [0, 0, 1, 1], [], []>} : vector<64x32xf32>, vector<32x16xf32>, vector<64x16xf32> -> vector<64x16xf32>
    %7 = vector.shape_cast %6 : vector<64x16xf32> to vector<8x8x16xf32>
    %8 = tpu.transpose %7, [1, 0, 2] : vector<8x8x16xf32> -> vector<8x8x16xf32>
    %9 = vector.shape_cast %8 : vector<8x8x16xf32> to vector<64x16xf32>
    %c0_5 = arith.constant 0 : index
    %c0_6 = arith.constant 0 : index
    %10 = vector.load %arg12[%c0_5, %c0_6] : memref<64x16xf32, #tpu.memory_space<vmem>>, vector<64x16xf32>
    tpu.vector_store %arg12[%c0_5, %c0_6], %9 {strides = array<i32>} : memref<64x16xf32, #tpu.memory_space<vmem>>, vector<64x16xf32>,
    %c0_7 = arith.constant 0 : index
    %c0_8 = arith.constant 0 : index
    %11 = vector.load %arg3[%c0_7, %c0_8] : memref<16x16xf32, #tpu.memory_space<vmem>>, vector<16x16xf32>
    %c0_9 = arith.constant 0 : index
    %c0_10 = arith.constant 0 : index
    %12 = vector.load %arg10[%c0_9, %c0_10] : memref<8x16xf32, #tpu.memory_space<vmem>>, vector<8x16xf32>
    %c0_i32_11 = arith.constant 0 : i32
    %c8_i32 = arith.constant 8 : i32
    %13 = arith.muli %c0_i32_11, %c8_i32 : i32
    %14 = tpu.assume_multiple %13, 8 : i32
    %15 = arith.index_cast %14 : i32 to index
    %c0_12 = arith.constant 0 : index
    %16 = vector.load %arg12[%15, %c0_12] : memref<64x16xf32, #tpu.memory_space<vmem>>, vector<8x16xf32>
    %cst_13 = arith.constant dense<0.000000e+00> : vector<8x16xf32>
    %17 = tpu.matmul %12, %11, %cst_13 {dimension_numbers = #tpu.dot_dimension_numbers<[1], [0], [0], [1], [0, 0, 1, 1], [], []>} : vector<8x16xf32>, vector<16x16xf32>, vector<8x16xf32> -> vector<8x16xf32>
    %18 = arith.addf %17, %16 : vector<8x16xf32>
    %19 = math.tanh %18 : vector<8x16xf32>
    %20 = arith.index_cast %14 : i32 to index
    %c0_14 = arith.constant 0 : index
    %21 = vector.load %arg13[%20, %c0_14] : memref<64x16xf32, #tpu.memory_space<vmem>>, vector<8x16xf32>
    tpu.vector_store %arg13[%20, %c0_14], %19 {strides = array<i32>} : memref<64x16xf32, #tpu.memory_space<vmem>>, vector<8x16xf32>,
    %c1_i32 = arith.constant 1 : i32
    %c8_i32_15 = arith.constant 8 : i32
    %22 = arith.muli %c1_i32, %c8_i32_15 : i32
    %23 = tpu.assume_multiple %22, 8 : i32
    %24 = arith.index_cast %23 : i32 to index
    %c0_16 = arith.constant 0 : index
    %25 = vector.load %arg12[%24, %c0_16] : memref<64x16xf32, #tpu.memory_space<vmem>>, vector<8x16xf32>
    %cst_17 = arith.constant dense<0.000000e+00> : vector<8x16xf32>
    %26 = tpu.matmul %19, %11, %cst_17 {dimension_numbers = #tpu.dot_dimension_numbers<[1], [0], [0], [1], [0, 0, 1, 1], [], []>} : vector<8x16xf32>, vector<16x16xf32>, vector<8x16xf32> -> vector<8x16xf32>
    %27 = arith.addf %26, %25 : vector<8x16xf32>
    %28 = math.tanh %27 : vector<8x16xf32>
    %29 = arith.index_cast %23 : i32 to index
    %c0_18 = arith.constant 0 : index
    %30 = vector.load %arg13[%29, %c0_18] : memref<64x16xf32, #tpu.memory_space<vmem>>, vector<8x16xf32>
    tpu.vector_store %arg13[%29, %c0_18], %28 {strides = array<i32>} : memref<64x16xf32, #tpu.memory_space<vmem>>, vector<8x16xf32>,
    %c2_i32 = arith.constant 2 : i32
    %c8_i32_19 = arith.constant 8 : i32
    %31 = arith.muli %c2_i32, %c8_i32_19 : i32
    %32 = tpu.assume_multiple %31, 8 : i32
    %33 = arith.index_cast %32 : i32 to index
    %c0_20 = arith.constant 0 : index
    %34 = vector.load %arg12[%33, %c0_20] : memref<64x16xf32, #tpu.memory_space<vmem>>, vector<8x16xf32>
    %cst_21 = arith.constant dense<0.000000e+00> : vector<8x16xf32>
    %35 = tpu.matmul %28, %11, %cst_21 {dimension_numbers = #tpu.dot_dimension_numbers<[1], [0], [0], [1], [0, 0, 1, 1], [], []>} : vector<8x16xf32>, vector<16x16xf32>, vector<8x16xf32> -> vector<8x16xf32>
    %36 = arith.addf %35, %34 : vector<8x16xf32>
    %37 = math.tanh %36 : vector<8x16xf32>
    %38 = arith.index_cast %32 : i32 to index
    %c0_22 = arith.constant 0 : index
    %39 = vector.load %arg13[%38, %c0_22] : memref<64x16xf32, #tpu.memory_space<vmem>>, vector<8x16xf32>
    tpu.vector_store %arg13[%38, %c0_22], %37 {strides = array<i32>} : memref<64x16xf32, #tpu.memory_space<vmem>>, vector<8x16xf32>,
    %c3_i32 = arith.constant 3 : i32
    %c8_i32_23 = arith.constant 8 : i32
    %40 = arith.muli %c3_i32, %c8_i32_23 : i32
    %41 = tpu.assume_multiple %40, 8 : i32
    %42 = arith.index_cast %41 : i32 to index
    %c0_24 = arith.constant 0 : index
    %43 = vector.load %arg12[%42, %c0_24] : memref<64x16xf32, #tpu.memory_space<vmem>>, vector<8x16xf32>
    %cst_25 = arith.constant dense<0.000000e+00> : vector<8x16xf32>
    %44 = tpu.matmul %37, %11, %cst_25 {dimension_numbers = #tpu.dot_dimension_numbers<[1], [0], [0], [1], [0, 0, 1, 1], [], []>} : vector<8x16xf32>, vector<16x16xf32>, vector<8x16xf32> -> vector<8x16xf32>
    %45 = arith.addf %44, %43 : vector<8x16xf32>
    %46 = math.tanh %45 : vector<8x16xf32>
    %47 = arith.index_cast %41 : i32 to index
    %c0_26 = arith.constant 0 : index
    %48 = vector.load %arg13[%47, %c0_26] : memref<64x16xf32, #tpu.memory_space<vmem>>, vector<8x16xf32>
    tpu.vector_store %arg13[%47, %c0_26], %46 {strides = array<i32>} : memref<64x16xf32, #tpu.memory_space<vmem>>, vector<8x16xf32>,
    %c4_i32 = arith.constant 4 : i32
    %c8_i32_27 = arith.constant 8 : i32
    %49 = arith.muli %c4_i32, %c8_i32_27 : i32
    %50 = tpu.assume_multiple %49, 8 : i32
    %51 = arith.index_cast %50 : i32 to index
    %c0_28 = arith.constant 0 : index
    %52 = vector.load %arg12[%51, %c0_28] : memref<64x16xf32, #tpu.memory_space<vmem>>, vector<8x16xf32>
    %cst_29 = arith.constant dense<0.000000e+00> : vector<8x16xf32>
    %53 = tpu.matmul %46, %11, %cst_29 {dimension_numbers = #tpu.dot_dimension_numbers<[1], [0], [0], [1], [0, 0, 1, 1], [], []>} : vector<8x16xf32>, vector<16x16xf32>, vector<8x16xf32> -> vector<8x16xf32>
    %54 = arith.addf %53, %52 : vector<8x16xf32>
    %55 = math.tanh %54 : vector<8x16xf32>
    %56 = arith.index_cast %50 : i32 to index
    %c0_30 = arith.constant 0 : index
    %57 = vector.load %arg13[%56, %c0_30] : memref<64x16xf32, #tpu.memory_space<vmem>>, vector<8x16xf32>
    tpu.vector_store %arg13[%56, %c0_30], %55 {strides = array<i32>} : memref<64x16xf32, #tpu.memory_space<vmem>>, vector<8x16xf32>,
    %c5_i32 = arith.constant 5 : i32
    %c8_i32_31 = arith.constant 8 : i32
    %58 = arith.muli %c5_i32, %c8_i32_31 : i32
    %59 = tpu.assume_multiple %58, 8 : i32
    %60 = arith.index_cast %59 : i32 to index
    %c0_32 = arith.constant 0 : index
    %61 = vector.load %arg12[%60, %c0_32] : memref<64x16xf32, #tpu.memory_space<vmem>>, vector<8x16xf32>
    %cst_33 = arith.constant dense<0.000000e+00> : vector<8x16xf32>
    %62 = tpu.matmul %55, %11, %cst_33 {dimension_numbers = #tpu.dot_dimension_numbers<[1], [0], [0], [1], [0, 0, 1, 1], [], []>} : vector<8x16xf32>, vector<16x16xf32>, vector<8x16xf32> -> vector<8x16xf32>
    %63 = arith.addf %62, %61 : vector<8x16xf32>
    %64 = math.tanh %63 : vector<8x16xf32>
    %65 = arith.index_cast %59 : i32 to index
    %c0_34 = arith.constant 0 : index
    %66 = vector.load %arg13[%65, %c0_34] : memref<64x16xf32, #tpu.memory_space<vmem>>, vector<8x16xf32>
    tpu.vector_store %arg13[%65, %c0_34], %64 {strides = array<i32>} : memref<64x16xf32, #tpu.memory_space<vmem>>, vector<8x16xf32>,
    %c6_i32 = arith.constant 6 : i32
    %c8_i32_35 = arith.constant 8 : i32
    %67 = arith.muli %c6_i32, %c8_i32_35 : i32
    %68 = tpu.assume_multiple %67, 8 : i32
    %69 = arith.index_cast %68 : i32 to index
    %c0_36 = arith.constant 0 : index
    %70 = vector.load %arg12[%69, %c0_36] : memref<64x16xf32, #tpu.memory_space<vmem>>, vector<8x16xf32>
    %cst_37 = arith.constant dense<0.000000e+00> : vector<8x16xf32>
    %71 = tpu.matmul %64, %11, %cst_37 {dimension_numbers = #tpu.dot_dimension_numbers<[1], [0], [0], [1], [0, 0, 1, 1], [], []>} : vector<8x16xf32>, vector<16x16xf32>, vector<8x16xf32> -> vector<8x16xf32>
    %72 = arith.addf %71, %70 : vector<8x16xf32>
    %73 = math.tanh %72 : vector<8x16xf32>
    %74 = arith.index_cast %68 : i32 to index
    %c0_38 = arith.constant 0 : index
    %75 = vector.load %arg13[%74, %c0_38] : memref<64x16xf32, #tpu.memory_space<vmem>>, vector<8x16xf32>
    tpu.vector_store %arg13[%74, %c0_38], %73 {strides = array<i32>} : memref<64x16xf32, #tpu.memory_space<vmem>>, vector<8x16xf32>,
    %c7_i32 = arith.constant 7 : i32
    %c8_i32_39 = arith.constant 8 : i32
    %76 = arith.muli %c7_i32, %c8_i32_39 : i32
    %77 = tpu.assume_multiple %76, 8 : i32
    %78 = arith.index_cast %77 : i32 to index
    %c0_40 = arith.constant 0 : index
    %79 = vector.load %arg12[%78, %c0_40] : memref<64x16xf32, #tpu.memory_space<vmem>>, vector<8x16xf32>
    %cst_41 = arith.constant dense<0.000000e+00> : vector<8x16xf32>
    %80 = tpu.matmul %73, %11, %cst_41 {dimension_numbers = #tpu.dot_dimension_numbers<[1], [0], [0], [1], [0, 0, 1, 1], [], []>} : vector<8x16xf32>, vector<16x16xf32>, vector<8x16xf32> -> vector<8x16xf32>
    %81 = arith.addf %80, %79 : vector<8x16xf32>
    %82 = math.tanh %81 : vector<8x16xf32>
    %83 = arith.index_cast %77 : i32 to index
    %c0_42 = arith.constant 0 : index
    %84 = vector.load %arg13[%83, %c0_42] : memref<64x16xf32, #tpu.memory_space<vmem>>, vector<8x16xf32>
    tpu.vector_store %arg13[%83, %c0_42], %82 {strides = array<i32>} : memref<64x16xf32, #tpu.memory_space<vmem>>, vector<8x16xf32>,
    %c8_i32_43 = arith.constant 8 : i32
    %c0_44 = arith.constant 0 : index
    %c0_45 = arith.constant 0 : index
    %85 = vector.load %arg10[%c0_44, %c0_45] : memref<8x16xf32, #tpu.memory_space<vmem>>, vector<8x16xf32>
    tpu.vector_store %arg10[%c0_44, %c0_45], %82 {strides = array<i32>} : memref<8x16xf32, #tpu.memory_space<vmem>>, vector<8x16xf32>,
    %c0_46 = arith.constant 0 : index
    %c0_47 = arith.constant 0 : index
    %86 = vector.load %arg6[%c0_46, %c0_47] : memref<1x32xf32, #tpu.memory_space<vmem>>, vector<1x32xf32>
    %87 = arith.negf %86 : vector<1x32xf32>
    %88 = math.exp %87 : vector<1x32xf32>
    %cst_48 = arith.constant 1.000000e+00 : f32
    %89 = vector.broadcast %cst_48 : f32 to vector<1x32xf32>
    %90 = arith.addf %89, %88 : vector<1x32xf32>
    %91 = arith.divf %89, %90 : vector<1x32xf32>
    %c0_49 = arith.constant 0 : index
    %c0_50 = arith.constant 0 : index
    %92 = vector.load %arg13[%c0_49, %c0_50] : memref<64x16xf32, #tpu.memory_space<vmem>>, vector<64x16xf32>
    %c0_51 = arith.constant 0 : index
    %c0_52 = arith.constant 0 : index
    %93 = vector.load %arg5[%c0_51, %c0_52] : memref<16x32xf32, #tpu.memory_space<vmem>>, vector<16x32xf32>
    %cst_53 = arith.constant dense<0.000000e+00> : vector<64x32xf32>
    %94 = tpu.matmul %92, %93, %cst_53 {dimension_numbers = #tpu.dot_dimension_numbers<[1], [0], [0], [1], [0, 0, 1, 1], [], []>} : vector<64x16xf32>, vector<16x32xf32>, vector<64x32xf32> -> vector<64x32xf32>
    %95 = vector.broadcast %91 : vector<1x32xf32> to vector<64x32xf32>
    %96 = arith.mulf %94, %95 : vector<64x32xf32>
    %c0_54 = arith.constant 0 : index
    %c0_55 = arith.constant 0 : index
    %97 = vector.load %arg11[%c0_54, %c0_55] : memref<16x32xf32, #tpu.memory_space<vmem>>, vector<16x32xf32>
    %c0_56 = arith.constant 0 : index
    %c0_57 = arith.constant 0 : index
    %98 = vector.load %arg14[%c0_56, %c0_57] : memref<72x32xf32, #tpu.memory_space<vmem>>, vector<16x32xf32>
    tpu.vector_store %arg14[%c0_56, %c0_57], %97 {strides = array<i32>} : memref<72x32xf32, #tpu.memory_space<vmem>>, vector<16x32xf32>,
    %99 = vector.extract_strided_slice %96 {offsets = [0, 0], sizes = [56, 32], strides = [1, 1]} : vector<64x32xf32> to vector<56x32xf32>
    %c16 = arith.constant 16 : index
    %c0_58 = arith.constant 0 : index
    %100 = vector.load %arg14[%c16, %c0_58] : memref<72x32xf32, #tpu.memory_space<vmem>>, vector<56x32xf32>
    tpu.vector_store %arg14[%c16, %c0_58], %99 {strides = array<i32>} : memref<72x32xf32, #tpu.memory_space<vmem>>, vector<56x32xf32>,
    %101 = vector.extract_strided_slice %96 {offsets = [48, 0], sizes = [16, 32], strides = [1, 1]} : vector<64x32xf32> to vector<16x32xf32>
    %c0_59 = arith.constant 0 : index
    %c0_60 = arith.constant 0 : index
    %102 = vector.load %arg11[%c0_59, %c0_60] : memref<16x32xf32, #tpu.memory_space<vmem>>, vector<16x32xf32>
    tpu.vector_store %arg11[%c0_59, %c0_60], %101 {strides = array<i32>} : memref<16x32xf32, #tpu.memory_space<vmem>>, vector<16x32xf32>,
    %c2 = arith.constant 2 : index
    %c0_61 = arith.constant 0 : index
    %c0_62 = arith.constant 0 : index
    %103 = vector.load %arg7[%c2, %c0_61, %c0_62] : memref<3x32x32xf32, #tpu.memory_space<vmem>>, vector<1x32x32xf32>
    %104 = vector.shape_cast %103 : vector<1x32x32xf32> to vector<32x32xf32>
    %cst_63 = arith.constant dense<0.000000e+00> : vector<64x32xf32>
    %105 = tpu.matmul %96, %104, %cst_63 {dimension_numbers = #tpu.dot_dimension_numbers<[1], [0], [0], [1], [0, 0, 1, 1], [], []>} : vector<64x32xf32>, vector<32x32xf32>, vector<64x32xf32> -> vector<64x32xf32>
    %c8 = arith.constant 8 : index
    %c0_64 = arith.constant 0 : index
    %106 = vector.load %arg14[%c8, %c0_64] : memref<72x32xf32, #tpu.memory_space<vmem>>, vector<64x32xf32>
    %c1 = arith.constant 1 : index
    %c0_65 = arith.constant 0 : index
    %c0_66 = arith.constant 0 : index
    %107 = vector.load %arg7[%c1, %c0_65, %c0_66] : memref<3x32x32xf32, #tpu.memory_space<vmem>>, vector<1x32x32xf32>
    %108 = vector.shape_cast %107 : vector<1x32x32xf32> to vector<32x32xf32>
    %cst_67 = arith.constant dense<0.000000e+00> : vector<64x32xf32>
    %109 = tpu.matmul %106, %108, %cst_67 {dimension_numbers = #tpu.dot_dimension_numbers<[1], [0], [0], [1], [0, 0, 1, 1], [], []>} : vector<64x32xf32>, vector<32x32xf32>, vector<64x32xf32> -> vector<64x32xf32>
    %110 = arith.addf %105, %109 : vector<64x32xf32>
    %c0_68 = arith.constant 0 : index
    %c0_69 = arith.constant 0 : index
    %111 = vector.load %arg14[%c0_68, %c0_69] : memref<72x32xf32, #tpu.memory_space<vmem>>, vector<64x32xf32>
    %c0_70 = arith.constant 0 : index
    %c0_71 = arith.constant 0 : index
    %c0_72 = arith.constant 0 : index
    %112 = vector.load %arg7[%c0_70, %c0_71, %c0_72] : memref<3x32x32xf32, #tpu.memory_space<vmem>>, vector<1x32x32xf32>
    %113 = vector.shape_cast %112 : vector<1x32x32xf32> to vector<32x32xf32>
    %cst_73 = arith.constant dense<0.000000e+00> : vector<64x32xf32>
    %114 = tpu.matmul %111, %113, %cst_73 {dimension_numbers = #tpu.dot_dimension_numbers<[1], [0], [0], [1], [0, 0, 1, 1], [], []>} : vector<64x32xf32>, vector<32x32xf32>, vector<64x32xf32> -> vector<64x32xf32>
    %115 = arith.addf %110, %114 : vector<64x32xf32>
    %c0_74 = arith.constant 0 : index
    %c0_75 = arith.constant 0 : index
    %116 = vector.load %arg8[%c0_74, %c0_75] : memref<1x32xf32, #tpu.memory_space<vmem>>, vector<1x32xf32>
    %117 = vector.broadcast %116 : vector<1x32xf32> to vector<64x32xf32>
    %118 = arith.addf %115, %117 : vector<64x32xf32>
    %119 = vector.shape_cast %118 : vector<64x32xf32> to vector<8x8x32xf32>
    %120 = tpu.transpose %119, [1, 0, 2] : vector<8x8x32xf32> -> vector<8x8x32xf32>
    %c0_76 = arith.constant 0 : index
    %c0_77 = arith.constant 0 : index
    %c0_78 = arith.constant 0 : index
    %121 = vector.load %arg9[%c0_76, %c0_77, %c0_78] : memref<8x8x32xf32, #tpu.memory_space<vmem>>, vector<8x8x32xf32>
    tpu.vector_store %arg9[%c0_76, %c0_77, %c0_78], %120 {strides = array<i32>} : memref<8x8x32xf32, #tpu.memory_space<vmem>>, vector<8x8x32xf32>,
    return
  }
  func.func @transform_0(%arg0: i32, %arg1: i32) -> (i32, i32, i32) {
    %c0_i32 = arith.constant 0 : i32
    %c0_i32_0 = arith.constant 0 : i32
    return %arg0, %arg1, %c0_i32 : i32, i32, i32
  }
  func.func @transform_1(%arg0: i32, %arg1: i32) -> (i32, i32) {
    %c0_i32 = arith.constant 0 : i32
    %c0_i32_0 = arith.constant 0 : i32
    %c0_i32_1 = arith.constant 0 : i32
    return %c0_i32, %c0_i32_0 : i32, i32
  }
  func.func @transform_2(%arg0: i32, %arg1: i32) -> (i32, i32) {
    %c0_i32 = arith.constant 0 : i32
    %c0_i32_0 = arith.constant 0 : i32
    %c0_i32_1 = arith.constant 0 : i32
    return %c0_i32, %c0_i32_0 : i32, i32
  }
  func.func @transform_3(%arg0: i32, %arg1: i32) -> (i32, i32) {
    %c0_i32 = arith.constant 0 : i32
    %c0_i32_0 = arith.constant 0 : i32
    %c0_i32_1 = arith.constant 0 : i32
    return %c0_i32, %c0_i32_0 : i32, i32
  }
  func.func @transform_4(%arg0: i32, %arg1: i32) -> (i32, i32) {
    %c0_i32 = arith.constant 0 : i32
    %c0_i32_0 = arith.constant 0 : i32
    %c0_i32_1 = arith.constant 0 : i32
    return %c0_i32, %c0_i32_0 : i32, i32
  }
  func.func @transform_5(%arg0: i32, %arg1: i32) -> (i32, i32, i32) {
    %c0_i32 = arith.constant 0 : i32
    %c0_i32_0 = arith.constant 0 : i32
    %c0_i32_1 = arith.constant 0 : i32
    %c0_i32_2 = arith.constant 0 : i32
    return %c0_i32, %c0_i32_0, %c0_i32_1 : i32, i32, i32
  }
  func.func @transform_6(%arg0: i32, %arg1: i32) -> (i32, i32) {
    %c0_i32 = arith.constant 0 : i32
    %c0_i32_0 = arith.constant 0 : i32
    %c0_i32_1 = arith.constant 0 : i32
    return %c0_i32, %c0_i32_0 : i32, i32
  }
  func.func @transform_7(%arg0: i32, %arg1: i32) -> (i32, i32, i32) {
    %c0_i32 = arith.constant 0 : i32
    %c0_i32_0 = arith.constant 0 : i32
    return %arg0, %arg1, %c0_i32 : i32, i32, i32
  }
}

</mosaic_0001>

<bundles_post_ra>
// kernel: tpu_custom_call.1
= control target key start
LH: loop header
LB: loop body
LE: loop exit
PB: predicated region body
PF: predicated region fallthrough
CT: control target
= control target key end

     0   :  { %12 = vsyncpa [#allocation8], 0  ;;  %s3286_s0 = inlined_call_operand.hbm [shape: f32[8,16,32], index: 0, kind: input, shape index: {}]   ;;  %s3287_s1 = inlined_call_operand.vmem [shape: f32[16,16], index: 1, kind: input, shape index: {}]   ;;  %s3288_s2 = inlined_call_operand.vmem [shape: f32[32,16], index: 2, kind: input, shape index: {}]   ;;  %s3289_s3 = inlined_call_operand.vmem [shape: f32[16,32], index: 3, kind: input, shape index: {}]   ;;  %s3290_s4 = inlined_call_operand.vmem [shape: f32[1,32], index: 4, kind: input, shape index: {}]   ;;  %s3291_s5 = inlined_call_operand.hbm [shape: f32[3,32,32], index: 5, kind: input, shape index: {}]   ;;  %s3292_s6 = inlined_call_operand.vmem [shape: f32[1,32], index: 6, kind: input, shape index: {}]   ;;  %s3293_s7 = inlined_call_operand.hbm [shape: f32[8,16,32], index: 7, kind: output, shape index: {}]  }
   0x1   :  { %14 = vsyncpa [#allocation8 + $0x1], 0 }
   0x2   :  { %15 = vsyncpa [#allocation11], 0 }
   0x3   :  { %16 = vsyncpa [#allocation9], 0 }
   0x4   :  { %18 = vsyncpa [#allocation9 + $0x1], 0  ;;  %s2804_s24 = smov 0   ;;  %s2806_s25 = smov 0  }
   0x5   :  { %s2808_s26 = smov 0   ;;  %s2810_s27 = smov 0  }
   0x6   :  { %s2812_s28 = smov 0   ;;  %s2814_s29 = smov 0  }
   0x7 LB: > { %3306 = sst [smem:[#allocation16_spill]] %s2727_s24  ;;  %s2122_s30 = sadd.s32 4294967295, %s2747_s29   ;;  %s2747_s29 = sphi %s2814_s29, %s24_s29   ;;  %s2743_s28 = sphi %s2812_s28, %s3333_s28   ;;  %s2739_s27 = sphi %s2810_s27, %s3332_s27   ;;  %s2735_s26 = sphi %s2808_s26, %s3331_s26   ;;  %s2731_s25 = sphi %s2806_s25, %s3330_s25   ;;  %s2727_s24 = sphi %s2804_s24, %s3329_s24  }
   0x8   : > { %3307 = sst [smem:[#allocation17_spill]] %s2747_s29  ;;  %s2123_s8 = sadd.s32 4294967294, %s2747_s29  }
   0x9   : > { %p52_p0 = scmp.ne.s32.totalorder %s2735_s26, %s2731_s25  ;;  %p53_p1 = scmp.eq.s32.totalorder %s2747_s29, 0 }
   0xa   : > { %p58_p2 = scmp.ne.s32.totalorder %s2731_s25, %s2727_s24  ;;  %p2841_p3 = scmp.eq.s32.totalorder %s2122_s30, 0 }
   0xb   : > { %p2845_p4 = por %p53_p1, %p52_p0  ;;  %p210_p5 = scmp.eq.s32.totalorder %s2122_s30, 1 }
   0xc   : > { %s3308_s9 = scalar_select %p2841_p3, 1, 0 }
   0xd   : > { %p2851_p6 = por %p2841_p3, %p58_p2  ;;  %p216_p7 = scmp.eq.s32.totalorder %s2123_s8, 1 }
   0xe   : > { %p2855_p8 = por %p210_p5, %p52_p0  ;;  %p2124_p9 = scmp.ge.s32.totalorder %s2747_s29, 1 }
   0xf   : > { %s3310_s11 = scalar_select %p2851_p6, 1, 0 }
  0x10   : > { %s3311_s12 = scalar_select %p2855_p8, 1, 0 }
  0x11   : > { %p2860_p10 = por %p216_p7, %p58_p2  ;;  %p223_p11 = scmp.lt.s32.totalorder %s2747_s29, 3 }
  0x12   : > { %s2749_s15 = smov [#allocation10]   ;;  %p2519_p1 = scmp.lt.s32.totalorder %s2747_s29, 2 }
  0x13   : > { %s3312_s13 = scalar_select %p2860_p10, 1, 0 }
  0x14   : > { %p2865_p12 = pnand %p2124_p9, %p223_p11  ;;  %s247_s16 = sshll.u32 %s2749_s15, 4  ;;  %s2869_s16 = int_to_ptr.vmem [resolvable:$true] %s247_s16 }
  0x15   : > { %3313 = sst [smem:[#allocation18_spill]] %s3312_s13  ;;  %p2883_p2 = pnand %p2519_p1, %p2845_p4 }
  0x16   : > { %s3314_s14 = scalar_select %p2865_p12, 1, 0 }
  0x17   : > { %p2506_p13 = pneg %p2865_p12  ;;  %s33_s19 = sadd.s32 1, %s2743_s28 }
  0x18   : > { %s3316_s18 = scalar_select %p2883_p2, 1, 0 }
  0x19   : > { %p2877_p5 = pnand %p2506_p13, %p2841_p3  ;;  %s2603_s22 = scalar_lea.hbm %s3291_s5, 1536 }
  0x1a   : > { %p2604_p7 = scmp.ne.s32.totalorder %s3291_s5, %s2603_s22  ;;  %p2610_p4 = scmp.lt.u32.totalorder %s2603_s22, %s3291_s5 }
  0x1b   : > { %p2605_p9 = pneg %p2877_p5 }
  0x1d   : > { %p2606_p11 = pnand %p2605_p9, %p2604_p7 }
  0x1f   : > { %p2607_p13 = pneg %p2606_p11 }
  0x21   : > { %p2612_p1 = pnand %p2610_p4, %p2607_p13 }
  0x23   : > { %2615 = shalt.err (!%p2612_p1)
}
  0x24   : > { %s2616_s15 = scalar_lea.vmem %s2869_s16, 1536  ;;  %p2624_p3 = scmp.lt.s32.totalorder %s2869_s16, %s2869_s16 }
  0x25   : > { %p2617_p0 = scmp.ne.s32.totalorder %s2869_s16, %s2616_s15  ;;  %p2625_p6 = scmp.lt.s32.totalorder %s2616_s15, %s2616_s15 }
  0x27   : > { %p2619_p10 = pnand %p2617_p0, %p2605_p9  ;;  %p2626_p12 = por %p2625_p6, %p2624_p3 }
  0x29   : > { %p2620_p8 = pneg %p2619_p10 }
  0x2b   : > { %p2627_p2 = pnand %p2626_p12, %p2620_p8 }
  0x2d   : > { %2630 = shalt.err (!%p2627_p2)
}
  0x2e   : > { %s3304_s20 = smov 128   ;;  %s3305_s21 = smov 8  }
  0x2f   : > { %2509 = dma.hbm_to_vmem [thread:$0]  (!%p2877_p5), %s3291_s5, 1536, %s2869_s16, [#allocation11], %s3304_s20, %s3304_s20, %s3305_s21  }
  0x30   : > { %p34_p3 = scmp.ge.s32.totalorder %s33_s19, 2  ;;  %s45_s30 = sadd.s32 1, %s2735_s26 }
  0x31   : > { %s264_s8 = sand.u32 1, %s2735_s26   ;;  %s2128_s29 = sshll.u32 %s2743_s28, 7 }
  0x32   : > { %s3335_s19 = smov (%p34_p3, %s33_s19), 0  ;;  %s2127_s10 = sshll.u32 %s264_s8, 6 }
  0x33   : > { %s41_s15 = ssub.s32 %s2743_s28, %s3335_s19  ;;  %s2922_s24 = scalar_lea.hbm %s3286_s0, %s2128_s29 }
  0x34   : > { %p43_p6 = scmp.eq.s32.totalorder %s41_s15, 0  ;;  %s268_s16 = scalar_lea.vmem [#allocation7], %s2127_s10 }
  0x35   : > { %s277_s22 = sshll.u32 %s268_s16, 4  ;;  %s2929_s20 = scalar_lea.sflag [#allocation8], %s264_s8  ;;  %s2927_s22 = int_to_ptr.vmem [resolvable:$true] %s277_s22 }
  0x36   : > { %s2925_s23 = scalar_select %p43_p6, %s2735_s26, %s45_s30  }
  0x37   : > { %s2631_s21 = scalar_lea.hbm %s2922_s24, 1024  ;;  %p3317_p10 = scmp.ne.s32.totalorder %s3316_s18, 0 }
  0x38   : > { %p2632_p8 = scmp.ne.s32.totalorder %s2922_s24, %s2631_s21  ;;  %s2636_s15 = scalar_lea.hbm %s3286_s0, 2048 }
  0x39   : > { %p2633_p12 = pneg %p3317_p10  ;;  %p2637_p2 = scmp.lt.u32.totalorder %s2922_s24, %s3286_s0 }
  0x3a   : > { %p2638_p7 = scmp.lt.u32.totalorder %s2636_s15, %s2631_s21  ;;  %p2640_p11 = scmp.lt.u32.totalorder %s2631_s21, %s2922_s24 }
  0x3b   : > { %p2634_p0 = pnand %p2633_p12, %p2632_p8 }
  0x3c   : > { %p2639_p9 = por %p2638_p7, %p2637_p2 }
  0x3d   : > { %p2635_p5 = pneg %p2634_p0 }
  0x3e   : > { %p2641_p13 = por %p2640_p11, %p2639_p9 }
  0x40   : > { %p2642_p4 = pnand %p2641_p13, %p2635_p5 }
  0x42   : > { %2645 = shalt.err (!%p2642_p4)
}
  0x43   : > { %s2646_s30 = scalar_lea.vmem %s2927_s22, 1024  ;;  %s2752_s8 = smov [#allocation7]  }
  0x44   : > { %p2647_p1 = scmp.ne.s32.totalorder %s2927_s22, %s2646_s30  ;;  %s2651_s16 = sshll.u32 %s2752_s8, 4  ;;  %s2652_s16 = int_to_ptr.vmem [resolvable:$false] %s2651_s16 }
  0x45   : > { %s2653_s29 = scalar_lea.vmem %s2652_s16, 2048  ;;  %p2654_p8 = scmp.lt.s32.totalorder %s2927_s22, %s2652_s16 }
  0x46   : > { %p2649_p3 = pnand %p2647_p1, %p2633_p12  ;;  %p2655_p0 = scmp.lt.s32.totalorder %s2653_s29, %s2646_s30 }
  0x48   : > { %p2650_p6 = pneg %p2649_p3  ;;  %p2656_p2 = por %p2655_p0, %p2654_p8 }
  0x4a   : > { %p2657_p7 = pnand %p2656_p2, %p2650_p6 }
  0x4c   : > { %2660 = shalt.err (!%p2657_p7)
}
  0x4d   : > { %s2753_s21 = smov 256   ;;  %s3318_s13 = smov 8  }
  0x4e   : > { %s3319_s15 = smov 128   ;;  %p3320_p12 = scmp.ne.s32.totalorder %s3314_s14, 0 }
  0x4f   : > { %2513 = dma.hbm_to_vmem [thread:$0]  (!%p3317_p10), %s2922_s24, 1024, %s2927_s22, %s2929_s20, %s2753_s21, %s3319_s15, %s3318_s13  }
  0x50   : > { %289 = sbr.rel (%p3320_p12) target bundleno = 2449 (0x991), region = 48  ;;  %s2962_s10 = sand.u32 (!%p3320_p12), 1, %s2731_s25  }
  0x51   : > { %s2130_s17 = sshll.u32 (!%p3320_p12), %s2962_s10, 6  ;;  %s292_s30 = scalar_lea.sflag (!%p3320_p12), [#allocation8], %s2962_s10 }
  0x52   : > { %s2966_s8 = scalar_lea.vmem (!%p3320_p12), [#allocation7], %s2130_s17  ;;  %p3321_p5 = scmp.ne.s32.totalorder (!%p3320_p12), %s3310_s11, 0 }
  0x57   : > { %2714 = dma.done.wait (%p3321_p5), %s292_s30, 1024  }
  0x58   : > { %2716 = vsyncadd (%p3321_p5), %s292_s30, 4294966272  ;;  %p3322_p10 = scmp.ne.s32.totalorder %s3308_s9, 0 }
  0x5a   : > { %2718 = dma.done.wait (%p3322_p10), [#allocation11], 1536  }
  0x5b   : > { %2720 = vsyncadd (%p3322_p10), [#allocation11], 4294965760  ;;  %s2976_s24 = scalar_lea.vmem [#allocation12], %s2130_s17  ;;  %p2133_p9 = scmp.ne.s32.totalorder %s2739_s27, 0 }
  0x5c   : > { %vm336_vm0 = vcmask (!%p2133_p9), 130048   ;;  %vm338_vm1 = vcmask (!%p2133_p9), 261120   ;;  %v2754_v0 = vmov (!%p2133_p9), 0.0  }
  0x5d   : > { %335 = sbr.rel (%p2133_p9) target bundleno = 100 (0x64), region = 60  ;;  %337 = vst.msk [vmem:[#allocation2] sm:$0xff] (!%p2133_p9), %vm336_vm0, %v2754_v0 }
  0x5e   : > { %339 = vst.msk [vmem:[#allocation3] sm:$0xff] (!%p2133_p9), %vm338_vm1, %v2754_v0  ;;  %340 = vst.msk [vmem:[#allocation3 + $0x8] sm:$0xff] (!%p2133_p9), %vm338_vm1, %v2754_v0 }
  0x64 PF: > { %v349_v1 = vld [vmem:[%s3288_s2] sm:$0xff]  ;;  %v350_v2 = vld [vmem:[%s3288_s2 + $0x8] sm:$0xff]  ;;  %v351_v3 = vld [vmem:[%s3288_s2 + $0x10] sm:$0xff]  ;;  %vm353_vm2 = vcmask 261120   ;;  %v2755_v7 = vmov 0.0|0.0   ;;  %vm2756_vm3 = vmmov 0   ;;  %v488_v23 = vlaneseq }
  0x65   : > { %v2422_v4 = vpack.c.bf16 %v350_v2, %v349_v1  ;;  %v352_v5 = vld [vmem:[%s3288_s2 + $0x18] sm:$0xff]  ;;  %v341_v6 = vld [vmem:[%s2966_s8] sm:$0xff]  ;;  %2445 = vmatprep.subr.bf16.mxu0 %v2755_v7  ;;  %v2757_v9 = vmov 0.0   ;;  %v629_v11 = vld [vmem:[%s3287_s1 + $0x8] sm:$0xff]  ;;  %vm619_vm4 = vcmask 130048   ;;  %s2185_s16 = sshll.u32 %s2739_s27, 7 }
  0x66   : > { %v2426_v8 = vpack.c.bf16 %v352_v5, %v351_v3  ;;  %2278 = vmatprep.mubr.msk.f32.mxu1 %vm353_vm2, %v341_v6  ;;  %2329 = vmatprep.mubr.msk.f32.mxu0 %vm2756_vm3, %v2757_v9  ;;  %v628_v10 = vld [vmem:[%s3287_s1] sm:$0xff]  ;;  %v342_v13 = vld [vmem:[%s2966_s8 + $0x8] sm:$0xff]  ;;  %v343_v14 = vld [vmem:[%s2966_s8 + $0x10] sm:$0xff]  ;;  %v2758_v21 = vmov 1983009808   ;;  %v3030_v25 = vshrl.u32 %v488_v23, 7  ;;  %s3219_s13 = scalar_lea.hbm %s3293_s7, %s2185_s16 }
  0x67   : > { %2423 = vmatprep.subr.bf16.mxu1 %v2422_v4  ;;  %v3002_v12 = vpack.c.bf16 %v629_v11, %v628_v10  ;;  %v344_v15 = vld [vmem:[%s2966_s8 + $0x18] sm:$0xff]  ;;  %v345_v16 = vld [vmem:[%s2966_s8 + $0x20] sm:$0xff]  ;;  %v346_v17 = vld [vmem:[%s2966_s8 + $0x28] sm:$0xff]  ;;  %v486_v22 = vunpack.c.l.s4 %v2758_v21  ;;  %v2759_v37 = vmov 1934713408   ;;  %s2027_s29 = sshll.u32 %s2976_s24, 4  ;;  %s3221_s29 = int_to_ptr.vmem [resolvable:$true] %s2027_s29 }
  0x68   : > { %2425 = vmatpush3.bf16.msra.mxu1 %v2422_v4  ;;  %v347_v18 = vld [vmem:[%s2966_s8 + $0x30] sm:$0xff]  ;;  %v348_v19 = vld [vmem:[%s2966_s8 + $0x38] sm:$0xff]  ;;  %v630_v20 = vld [vmem:[#allocation2] sm:$0xff]  ;;  %v550_v38 = vunpack.c.l.s4 %v2759_v37  ;;  %s2012_s15 = scalar_lea.sflag [#allocation9], %s2962_s10  ;;  %s2661_s17 = scalar_lea.vmem %s3221_s29, 1024 }
  0x69   : > { %2427 = vmatprep.subr.bf16.mxu1 %v2426_v8  ;;  %2447 = vmatpush3.bf16.msra.mxu0 %v3002_v12  ;;  %v487_v24 = vunpack.c.0.s8 %v486_v22  ;;  %p2662_p11 = scmp.ne.s32.totalorder %s3221_s29, %s2661_s17  ;;  %p3323_p13 = scmp.ne.s32.totalorder %s3311_s12, 0 }
  0x6a   : > { %2451 = vmatprep.subr.bf16.mxu0 %v2755_v7  ;;  %v551_v47 = vunpack.c.0.s8 %v550_v38  ;;  %s2760_s30 = smov [#allocation12]  }
  0x6b   : > { %v3033_v28 = vsub.s32 %v487_v24, %v3030_v25  ;;  %p2663_p4 = pnand %p2662_p11, %p3323_p13  ;;  %s2665_s8 = sshll.u32 %s2760_s30, 4  ;;  %s2666_s8 = int_to_ptr.vmem [resolvable:$false] %s2665_s8 }
  0x6c   : > { %2429 = vmatpush3.bf16.msra.mxu1 %v2426_v8  ;;  %v3040_v54 = vsub.s32 %v551_v47, %v3030_v25  ;;  %s2667_s11 = scalar_lea.vmem %s2666_s8, 2048  ;;  %p2668_p3 = scmp.lt.s32.totalorder %s3221_s29, %s2666_s8 }
  0x6d   : > { %2430 = vmatprep.subr.bf16.mxu1 %v2755_v7  ;;  %p2664_p1 = pneg %p2663_p4  ;;  %p2669_p6 = scmp.lt.s32.totalorder %s2667_s11, %s2661_s17 }
  0x6f   : > { %2279 = vmatmul.mubr.msk.f32.vlgmr.msra.gmra.mrb[0].mxu1 %vm353_vm2, %v342_v13  ;;  %p2670_p8 = por %p2669_p6, %p2668_p3 }
  0x70   : > { %2281 = vmatprep.mubr.msk.f32.mxu1 %vm353_vm2, %v343_v14  ;;  %2432 = vmatpush3.bf16.msra.mxu1 %v3002_v12 }
  0x71   : > { %2433 = vmatprep.subr.bf16.mxu1 %v2755_v7  ;;  %p2671_p0 = pnand %p2670_p8, %p2664_p1 }
  0x73   : > { %2282 = vmatmul.mubr.msk.f32.gmra.mrb[2].mxu1 %vm353_vm2, %v344_v15 }
  0x74   : > { %2284 = vmatprep.mubr.msk.f32.mxu1 %vm353_vm2, %v345_v16 }
  0x77   : > { %2285 = vmatmul.mubr.msk.f32.gmra.mrb[4].mxu1 %vm353_vm2, %v346_v17 }
  0x78   : > { %2287 = vmatprep.mubr.msk.f32.mxu1 %vm353_vm2, %v347_v18 }
  0x7b   : > { %2288 = vmatmul.mubr.msk.f32.gmra.mrb[6].mxu1 %vm353_vm2, %v348_v19 }
  0x7c   : > { %2294 = vmatprep.mubr.msk.f32.mxu1 %vm2756_vm3, %v2757_v9 }
  0x7f   : > { %2295 = vmatmul.mubr.msk.f32.vlgmr.msra.gmra.mrb[8].mxu1 %vm619_vm4, %v630_v20 }
  0x80   : > { %2435 = vmatpush3.bf16.msra.mxu1 %v3002_v12  ;;  %2301 = vmatprep.mubr.msk.f32.mxu1 %vm2756_vm3, %v2757_v9 }
  0x81   : > { %2436 = vmatprep.subr.bf16.mxu1 %v2755_v7 }
 0x142   : > { %v2280_v26 = vpop.f32.mrb[0].mxu1 }
 0x143   : > { %v444_v27 = vpop.f32.mrb[1].mxu1 }
 0x146   : > { %v2283_v29 = vpop.f32.mrb[2].mxu1 }
 0x147   : > { %v499_v30 = vcombine.low %v2280_v26, %v2283_v29  ;;  %v500_v31 = vcombine.high %v2280_v26, %v2283_v29  ;;  %v454_v32 = vpop.f32.mrb[3].mxu1 }
 0x148   : > { %v483_v33 = vcombine.low %v444_v27, %v454_v32  ;;  %v484_v34 = vcombine.high %v444_v27, %v454_v32 }
 0x149   : > { %v507_v35 = vrot.slane %v499_v30, %v3033_v28  ;;  %v514_v36 = vrot.slane %v500_v31, %v3033_v28 }
 0x14a   : > { %v491_v39 = vrot.slane %v483_v33, %v3033_v28  ;;  %v498_v40 = vrot.slane %v484_v34, %v3033_v28  ;;  %v2286_v41 = vpop.f32.mrb[4].mxu1 }
 0x14b   : > { %v464_v42 = vpop.f32.mrb[5].mxu1 }
 0x14c   : > { %v547_v43 = vcombine.low %v491_v39, %v507_v35  ;;  %v548_v44 = vcombine.high %v491_v39, %v507_v35  ;;  %v563_v45 = vcombine.low %v498_v40, %v514_v36  ;;  %v564_v46 = vcombine.high %v498_v40, %v514_v36 }
 0x14e   : > { %v2289_v48 = vpop.f32.mrb[6].mxu1  ;;  %v555_v1 = vrot.slane %v547_v43, %v3040_v54  ;;  %v562_v2 = vrot.slane %v548_v44, %v3040_v54  ;;  %v571_v8 = vrot.slane %v563_v45, %v3040_v54  ;;  %v578_v10 = vrot.slane %v564_v46, %v3040_v54  ;;  %v1269_v44 = vld [vmem:[%s3289_s3] sm:$0xff]  ;;  %v1270_v45 = vld [vmem:[%s3289_s3 + $0x8] sm:$0xff] }
 0x14f   : > { %v531_v49 = vcombine.low %v2286_v41, %v2289_v48  ;;  %v532_v50 = vcombine.high %v2286_v41, %v2289_v48  ;;  %v474_v51 = vpop.f32.mrb[7].mxu1  ;;  %v2454_v46 = vpack.c.bf16 %v1270_v45, %v1269_v44  ;;  %v1414_v44 = vld [vmem:[#allocation3] sm:$0xff]  ;;  %v1430_v45 = vld [vmem:[#allocation10 + $0x50] sm:$0xff] }
 0x150   : > { %v515_v52 = vcombine.low %v464_v42, %v474_v51  ;;  %v516_v53 = vcombine.high %v464_v42, %v474_v51  ;;  %1416 = vst.msk [vmem:[#allocation6] sm:$0xff] %vm353_vm2, %v1414_v44 }
 0x151   : > { %v539_v55 = vrot.slane %v531_v49, %v3033_v28  ;;  %v546_v56 = vrot.slane %v532_v50, %v3033_v28 }
 0x152   : > { %v523_v57 = vrot.slane %v515_v52, %v3033_v28  ;;  %v530_v58 = vrot.slane %v516_v53, %v3033_v28  ;;  %v701_v59 = vpop.f32.mrb[8].mxu1 }
 0x153   : > { %v2296_v60 = vpop.f32.mrb[9].mxu1 }
 0x154   : > { %v579_v61 = vcombine.low %v523_v57, %v539_v55  ;;  %v580_v62 = vcombine.high %v523_v57, %v539_v55  ;;  %v595_v63 = vcombine.low %v530_v58, %v546_v56  ;;  %v596_v0 = vcombine.high %v530_v58, %v546_v56  ;;  %v1441_v57 = vld [vmem:[#allocation10 + $0x20] sm:$0xff]  ;;  %v1442_v58 = vld [vmem:[#allocation10 + $0x28] sm:$0xff]  ;;  %v1415_v60 = vld [vmem:[#allocation3 + $0x8] sm:$0xff] }
 0x155   : > { %1417 = vst.msk [vmem:[#allocation6 + $0x8] sm:$0xff] %vm353_vm2, %v1415_v60 }
 0x156   : > { %v587_v3 = vrot.slane %v579_v61, %v3040_v54  ;;  %v594_v4 = vrot.slane %v580_v62, %v3040_v54  ;;  %v603_v5 = vrot.slane %v595_v63, %v3040_v54  ;;  %v610_v6 = vrot.slane %v596_v0, %v3040_v54  ;;  %v1254_v61 = vld [vmem:[%s3290_s4] sm:$0x1] }
 0x157   : > { %v2150_v62 = vmul.f32 -1.442695, %v1254_v61  ;;  %v2183_v61 = vld [vmem:[%s3292_s6] ss:$0 sm:$0xff] }
 0x158   : > { %v611_v11 = vcombine.low %v555_v1, %v587_v3  ;;  %v612_v13 = vcombine.high %v555_v1, %v587_v3  ;;  %v613_v14 = vcombine.low %v562_v2, %v594_v4  ;;  %v614_v15 = vcombine.high %v562_v2, %v594_v4 }
 0x159   : > { %v615_v16 = vcombine.low %v571_v8, %v603_v5  ;;  %v616_v17 = vcombine.high %v571_v8, %v603_v5  ;;  %v617_v18 = vcombine.low %v578_v10, %v610_v6  ;;  %v618_v19 = vcombine.high %v578_v10, %v610_v6 }
 0x15a   : > { %620 = vst.msk [vmem:[#allocation4] sm:$0xff] %vm619_vm4, %v611_v11  ;;  %621 = vst.msk [vmem:[#allocation4 + $0x8] sm:$0xff] %vm619_vm4, %v612_v13  ;;  %v1403_v1 = vsub.s32 0, %v3030_v25 }
 0x15b   : > { %622 = vst.msk [vmem:[#allocation4 + $0x10] sm:$0xff] %vm619_vm4, %v613_v14  ;;  %623 = vst.msk [vmem:[#allocation4 + $0x18] sm:$0xff] %vm619_vm4, %v614_v15 }
 0x15c   : > { %624 = vst.msk [vmem:[#allocation4 + $0x20] sm:$0xff] %vm619_vm4, %v615_v16  ;;  %625 = vst.msk [vmem:[#allocation4 + $0x28] sm:$0xff] %vm619_vm4, %v616_v17  ;;  %v1443_v17 = vld [vmem:[#allocation10 + $0x30] sm:$0xff] }
 0x15d   : > { %626 = vst.msk [vmem:[#allocation4 + $0x30] sm:$0xff] %vm619_vm4, %v617_v18  ;;  %627 = vst.msk [vmem:[#allocation4 + $0x38] sm:$0xff] %vm619_vm4, %v618_v19  ;;  %v1444_v18 = vld [vmem:[#allocation10 + $0x38] sm:$0xff] }
 0x161   : > { %v631_v20 = vld [vmem:[#allocation4] sm:$0xff]  ;;  %v708_v23 = vld [vmem:[#allocation4 + $0x8] sm:$0xff] }
 0x162   : > { %v702_v21 = vadd.f32 %v701_v59, %v631_v20  ;;  %v786_v30 = vld [vmem:[#allocation4 + $0x10] sm:$0xff]  ;;  %v864_v35 = vld [vmem:[#allocation4 + $0x18] sm:$0xff]  ;;  %v2458_v59 = vpack.c.bf16 %v1442_v58, %v1441_v57  ;;  %v1703_v58 = vld [vmem:[#allocation6] sm:$0xff] }
 0x163   : > { %v942_v40 = vld [vmem:[#allocation4 + $0x20] sm:$0xff]  ;;  %v1020_v47 = vld [vmem:[#allocation4 + $0x28] sm:$0xff] }
 0x164   : > { %2583 = vtanh.f32 %v702_v21  ;;  %v1098_v3 = vld [vmem:[#allocation4 + $0x30] sm:$0xff]  ;;  %v2462_v21 = vpack.c.bf16 %v1444_v18, %v1443_v17 }
 0x16e   : > { %v2584_v22 = vpop.eup %2583 }
 0x16f   : > { %706 = vst.msk [vmem:[#allocation5] sm:$0xff] %vm619_vm4, %v2584_v22  ;;  %2302 = vmatmul.mubr.msk.f32.vlgmr.msra.gmra.mrb[10].mxu1 %vm619_vm4, %v2584_v22  ;;  %v3131_v22 = vld [vmem:[#allocation6 + $0x8] sm:$0xff] }
 0x170   : > { %2438 = vmatpush3.bf16.msra.mxu1 %v3002_v12  ;;  %2308 = vmatprep.mubr.msk.f32.mxu1 %vm2756_vm3, %v2757_v9 }
 0x171   : > { %2439 = vmatprep.subr.bf16.mxu1 %v2755_v7 }
 0x242   : > { %v778_v24 = vpop.f32.mrb[10].mxu1 }
 0x243   : > { %v779_v26 = vadd.f32 %v778_v24, %v708_v23  ;;  %v2303_v27 = vpop.f32.mrb[11].mxu1 }
 0x245   : > { %2585 = vtanh.f32 %v779_v26 }
 0x24f   : > { %v2586_v29 = vpop.eup %2585 }
 0x250   : > { %784 = vst.msk [vmem:[#allocation5 + $0x8] sm:$0xff] %vm619_vm4, %v2586_v29  ;;  %2309 = vmatmul.mubr.msk.f32.vlgmr.msra.gmra.mrb[12].mxu1 %vm619_vm4, %v2586_v29 }
 0x251   : > { %2441 = vmatpush3.bf16.msra.mxu1 %v3002_v12  ;;  %2315 = vmatprep.mubr.msk.f32.mxu1 %vm2756_vm3, %v2757_v9 }
 0x252   : > { %2442 = vmatprep.subr.bf16.mxu1 %v2755_v7 }
 0x323   : > { %v856_v31 = vpop.f32.mrb[12].mxu1 }
 0x324   : > { %v857_v32 = vadd.f32 %v856_v31, %v786_v30  ;;  %v2310_v33 = vpop.f32.mrb[13].mxu1 }
 0x326   : > { %2587 = vtanh.f32 %v857_v32 }
 0x330   : > { %v2588_v34 = vpop.eup %2587 }
 0x331   : > { %862 = vst.msk [vmem:[#allocation5 + $0x10] sm:$0xff] %vm619_vm4, %v2588_v34  ;;  %2316 = vmatmul.mubr.msk.f32.vlgmr.msra.gmra.mrb[14].mxu1 %vm619_vm4, %v2588_v34 }
 0x332   : > { %2444 = vmatpush3.bf16.msra.mxu1 %v3002_v12  ;;  %2322 = vmatprep.mubr.msk.f32.mxu1 %vm2756_vm3, %v2757_v9 }
 0x333   : > { %2448 = vmatprep.subr.bf16.mxu1 %v2755_v7 }
 0x338   : > { %v1263_v52 = vld [vmem:[#allocation5 + $0x10] sm:$0xff] }
 0x404   : > { %v934_v36 = vpop.f32.mrb[14].mxu1 }
 0x405   : > { %v935_v37 = vadd.f32 %v934_v36, %v864_v35  ;;  %v2317_v38 = vpop.f32.mrb[15].mxu1  ;;  %v1428_v36 = vld [vmem:[#allocation10 + $0x40] sm:$0xff] }
 0x407   : > { %2589 = vtanh.f32 %v935_v37  ;;  %v1429_v37 = vld [vmem:[#allocation10 + $0x48] sm:$0xff] }
 0x408   : > { %v2466_v38 = vpack.c.bf16 %v1429_v37, %v1428_v36 }
 0x411   : > { %v2590_v39 = vpop.eup %2589 }
 0x412   : > { %940 = vst.msk [vmem:[#allocation5 + $0x18] sm:$0xff] %vm619_vm4, %v2590_v39  ;;  %2323 = vmatmul.mubr.msk.f32.vlgmr.msra.gmra.mrb[16].mxu1 %vm619_vm4, %v2590_v39  ;;  %v1176_v39 = vld [vmem:[#allocation4 + $0x38] sm:$0xff] }
 0x413   : > { %2450 = vmatpush3.bf16.msra.mxu1 %v3002_v12  ;;  %2336 = vmatprep.mubr.msk.f32.mxu1 %vm2756_vm3, %v2757_v9 }
 0x414   : > { %2455 = vmatprep.subr.bf16.mxu1 %v2454_v46 }
 0x419   : > { %v1264_v53 = vld [vmem:[#allocation5 + $0x18] sm:$0xff] }
 0x4e5   : > { %v1012_v41 = vpop.f32.mrb[16].mxu1 }
 0x4e6   : > { %v1013_v42 = vadd.f32 %v1012_v41, %v942_v40  ;;  %v2324_v43 = vpop.f32.mrb[17].mxu1 }
 0x4e8   : > { %2591 = vtanh.f32 %v1013_v42 }
 0x4f2   : > { %v2592_v7 = vpop.eup %2591 }
 0x4f3   : > { %1018 = vst.msk [vmem:[#allocation5 + $0x20] sm:$0xff] %vm619_vm4, %v2592_v7  ;;  %2330 = vmatmul.mubr.msk.f32.vlgmr.msra.gmra.mrb[0].mxu0 %vm619_vm4, %v2592_v7 }
 0x4f4   : > { %2453 = vmatpush3.bf16.msra.mxu0 %v3002_v12  ;;  %2343 = vmatprep.mubr.msk.f32.mxu0 %vm2756_vm3, %v2757_v9  ;;  %v1261_v9 = vld [vmem:[#allocation5] sm:$0xff]  ;;  %v1262_v12 = vld [vmem:[#allocation5 + $0x8] sm:$0xff] }
 0x4f5   : > { %2459 = vmatprep.subr.bf16.mxu0 %v2458_v59 }
 0x4fa   : > { %v1265_v55 = vld [vmem:[#allocation5 + $0x20] sm:$0xff] }
 0x5c6   : > { %v1090_v48 = vpop.f32.mrb[0].mxu0 }
 0x5c7   : > { %v1091_v49 = vadd.f32 %v1090_v48, %v1020_v47  ;;  %v2331_v50 = vpop.f32.mrb[1].mxu0  ;;  %v1711_v48 = vld [vmem:[#allocation10] sm:$0xff] }
 0x5c9   : > { %2593 = vtanh.f32 %v1091_v49  ;;  %v1712_v49 = vld [vmem:[#allocation10 + $0x8] sm:$0xff] }
 0x5ca   : > { %2595 = vpow2.f32 %v2150_v62  ;;  %v2474_v50 = vpack.c.bf16 %v1712_v49, %v1711_v48 }
 0x5d3   : > { %v2594_v51 = vpop.eup %2593 }
 0x5d4   : > { %1096 = vst.msk [vmem:[#allocation5 + $0x28] sm:$0xff] %vm619_vm4, %v2594_v51  ;;  %2337 = vmatmul.mubr.msk.f32.vlgmr.msra.gmra.mrb[18].mxu1 %vm619_vm4, %v2594_v51  ;;  %v2596_v63 = vpop.eup %2595 }
 0x5d5   : > { %2457 = vmatpush3.bf16.msra.mxu1 %v2454_v46  ;;  %2350 = vmatprep.mubr.msk.f32.mxu1 %vm619_vm4, %v1261_v9  ;;  %v1258_v0 = vadd.f32 1.0, %v2596_v63  ;;  %v1431_v46 = vld [vmem:[#allocation10 + $0x58] sm:$0xff] }
 0x5d6   : > { %v2470_v47 = vpack.c.bf16 %v1431_v46, %v1430_v45 }
 0x5d7   : > { %2597 = vrcp.f32 %v1258_v0 }
 0x5d8   : > { %2351 = vmatmul.mubr.msk.f32.vlgmr.msra.gmra.mrb[20].mxu1 %vm619_vm4, %v1262_v12 }
 0x5d9   : > { %2353 = vmatprep.mubr.msk.f32.mxu1 %vm619_vm4, %v1263_v52 }
 0x5db   : > { %v1266_v56 = vld [vmem:[#allocation5 + $0x28] sm:$0xff] }
 0x5dc   : > { %2354 = vmatmul.mubr.msk.f32.gmra.mrb[22].mxu1 %vm619_vm4, %v1264_v53 }
 0x5dd   : > { %2356 = vmatprep.mubr.msk.f32.mxu1 %vm619_vm4, %v1265_v55  ;;  %v1713_v55 = vld [vmem:[#allocation10 + $0x10] sm:$0xff] }
 0x5e0   : > { %2357 = vmatmul.mubr.msk.f32.gmra.mrb[24].mxu1 %vm619_vm4, %v1266_v56  ;;  %v1714_v56 = vld [vmem:[#allocation10 + $0x18] sm:$0xff] }
 0x5e1   : > { %v2598_v2 = vpop.eup %2597  ;;  %v2478_v57 = vpack.c.bf16 %v1714_v56, %v1713_v55 }
 0x5e2   : > { %v3109_v8 = vrot.slane %v2598_v2, %v1403_v1 }
 0x6a7   : > { %v1168_v4 = vpop.f32.mrb[18].mxu1 }
 0x6a8   : > { %v1169_v5 = vadd.f32 %v1168_v4, %v1098_v3  ;;  %v2338_v6 = vpop.f32.mrb[19].mxu1 }
 0x6aa   : > { %2599 = vtanh.f32 %v1169_v5 }
 0x6ab   : > { %v2352_v10 = vpop.f32.mrb[20].mxu1 }
 0x6ac   : > { %v3112_v11 = vmul.f32 %v2352_v10, %v3109_v8  ;;  %v1361_v13 = vpop.f32.mrb[21].mxu1 }
 0x6ad   : > { %v3115_v14 = vmul.f32 %v3109_v8, %v1361_v13 }
 0x6ae   : > { %1419 = vst.msk [vmem:[#allocation6 + $0x18] sm:$0xff] %vm353_vm2, %v3112_v11 }
 0x6af   : > { %1418 = vst.msk [vmem:[#allocation6 + $0x10] sm:$0xff] %vm353_vm2, %v3115_v14  ;;  %v2355_v25 = vpop.f32.mrb[22].mxu1 }
 0x6b0   : > { %v3122_v15 = vmul.f32 %v2355_v25, %v3109_v8  ;;  %v1371_v16 = vpop.f32.mrb[23].mxu1 }
 0x6b1   : > { %v3125_v19 = vmul.f32 %v3109_v8, %v1371_v16 }
 0x6b2   : > { %1421 = vst.msk [vmem:[#allocation6 + $0x28] sm:$0xff] %vm353_vm2, %v3122_v15 }
 0x6b3   : > { %1420 = vst.msk [vmem:[#allocation6 + $0x20] sm:$0xff] %vm353_vm2, %v3125_v19  ;;  %v2358_v20 = vpop.f32.mrb[24].mxu1 }
 0x6b4   : > { %v2600_v23 = vpop.eup %2599  ;;  %v3134_v24 = vmul.f32 %v2358_v20, %v3109_v8  ;;  %v1381_v26 = vpop.f32.mrb[25].mxu1 }
 0x6b5   : > { %1174 = vst.msk [vmem:[#allocation5 + $0x30] sm:$0xff] %vm619_vm4, %v2600_v23  ;;  %v3138_v27 = vmul.f32 %v3109_v8, %v1381_v26  ;;  %2344 = vmatmul.mubr.msk.f32.vlgmr.msra.gmra.mrb[2].mxu0 %vm619_vm4, %v2600_v23  ;;  %v3152_v31 = vld [vmem:[#allocation6 + $0x18] sm:$0xff] }
 0x6b6   : > { %1423 = vst.msk [vmem:[#allocation6 + $0x38] sm:$0xff] %vm353_vm2, %v3134_v24  ;;  %2461 = vmatpush3.bf16.msra.mxu0 %v2458_v59  ;;  %2370 = vmatprep.mubr.msk.f32.mxu0 %vm353_vm2, %v3131_v22  ;;  %v3147_v29 = vld [vmem:[#allocation6 + $0x10] sm:$0xff] }
 0x6b7   : > { %1422 = vst.msk [vmem:[#allocation6 + $0x30] sm:$0xff] %vm353_vm2, %v3138_v27  ;;  %2463 = vmatprep.subr.bf16.mxu0 %v2462_v21 }
 0x6b9   : > { %v1436_v33 = vld [vmem:[#allocation6 + $0x28] sm:$0xff] }
 0x6ba   : > { %2465 = vmatpush3.bf16.msra.mxu0 %v2462_v21  ;;  %v1435_v32 = vld [vmem:[#allocation6 + $0x20] sm:$0xff] }
 0x6bb   : > { %2467 = vmatprep.subr.bf16.mxu0 %v2466_v38 }
 0x6bc   : > { %v1267_v30 = vld [vmem:[#allocation5 + $0x30] sm:$0xff] }
 0x6bd   : > { %2371 = vmatmul.mubr.msk.f32.vlgmr.msra.gmra.mrb[4].mxu0 %vm353_vm2, %v3147_v29  ;;  %2359 = vmatprep.mubr.msk.f32.mxu1 %vm619_vm4, %v1267_v30  ;;  %v1438_v35 = vld [vmem:[#allocation6 + $0x38] sm:$0xff] }
 0x6be   : > { %2373 = vmatprep.mubr.msk.f32.mxu0 %vm353_vm2, %v3152_v31  ;;  %v1437_v34 = vld [vmem:[#allocation6 + $0x30] sm:$0xff]  ;;  %2469 = vmatpush3.bf16.msra.mxu0 %v2466_v38 }
 0x6bf   : > { %2471 = vmatprep.subr.bf16.mxu0 %v2470_v47 }
 0x6c1   : > { %2374 = vmatmul.mubr.msk.f32.gmra.mrb[6].mxu0 %vm353_vm2, %v1435_v32 }
 0x6c2   : > { %2376 = vmatprep.mubr.msk.f32.mxu0 %vm353_vm2, %v1436_v33  ;;  %2473 = vmatpush3.bf16.msra.mxu0 %v2470_v47 }
 0x6c3   : > { %2475 = vmatprep.subr.bf16.mxu0 %v2474_v50 }
 0x6c5   : > { %2377 = vmatmul.mubr.msk.f32.gmra.mrb[8].mxu0 %vm353_vm2, %v1437_v34 }
 0x6c6   : > { %2379 = vmatprep.mubr.msk.f32.mxu0 %vm353_vm2, %v1438_v35 }
 0x788   : > { %v1246_v40 = vpop.f32.mrb[2].mxu0 }
 0x789   : > { %v1247_v41 = vadd.f32 %v1246_v40, %v1176_v39  ;;  %v2345_v42 = vpop.f32.mrb[3].mxu0 }
 0x78b   : > { %2601 = vtanh.f32 %v1247_v41 }
 0x795   : > { %v2602_v43 = vpop.eup %2601 }
 0x796   : > { %1252 = vst.msk [vmem:[#allocation5 + $0x38] sm:$0xff] %vm619_vm4, %v2602_v43  ;;  %1253 = vst.msk [vmem:[#allocation2] sm:$0xff] %vm619_vm4, %v2602_v43 }
 0x79d   : > { %v1268_v7 = vld [vmem:[#allocation5 + $0x38] sm:$0xff] }
 0x79e   : > { %2360 = vmatmul.mubr.msk.f32.gmra.mrb[26].mxu1 %vm619_vm4, %v1268_v7 }
 0x871   : > { %v2361_v51 = vpop.f32.mrb[26].mxu1 }
 0x872   : > { %v1413_v9 = vmul.f32 %v2361_v51, %v3109_v8  ;;  %v1391_v12 = vpop.f32.mrb[27].mxu1 }
 0x873   : > { %v1412_v52 = vmul.f32 %v3109_v8, %v1391_v12 }
 0x874   : > { %1426 = vst.msk [vmem:[#allocation3 + $0x8] sm:$0xff] %vm353_vm2, %v1413_v9 }
 0x875   : > { %1424 = vst.msk [vmem:[#allocation6 + $0x40] sm:$0xff] %vm353_vm2, %v1412_v52  ;;  %1425 = vst.msk [vmem:[#allocation3] sm:$0xff] %vm353_vm2, %v1412_v52 }
 0x87c   : > { %v1439_v53 = vld [vmem:[#allocation6 + $0x40] sm:$0xff] }
 0x87d   : > { %2380 = vmatmul.mubr.msk.f32.gmra.mrb[10].mxu0 %vm353_vm2, %v1439_v53 }
 0x87e   : > { %2390 = vmatprep.mubr.msk.f32.mxu0 %vm353_vm2, %v3115_v14 }
 0x881   : > { %2391 = vmatmul.mubr.msk.f32.vlgmr.msra.gmra.mrb[4].mxu0 %vm353_vm2, %v3112_v11 }
 0x882   : > { %2477 = vmatpush3.bf16.msra.mxu0 %v2474_v50  ;;  %2393 = vmatprep.mubr.msk.f32.mxu0 %vm353_vm2, %v3125_v19 }
 0x883   : > { %2479 = vmatprep.subr.bf16.mxu0 %v2478_v57 }
 0x885   : > { %2394 = vmatmul.mubr.msk.f32.gmra.mrb[6].mxu0 %vm353_vm2, %v3122_v15 }
 0x886   : > { %2396 = vmatprep.mubr.msk.f32.mxu0 %vm353_vm2, %v3138_v27  ;;  %2481 = vmatpush3.bf16.msra.mxu0 %v2478_v57 }
 0x889   : > { %2397 = vmatmul.mubr.msk.f32.gmra.mrb[8].mxu0 %vm353_vm2, %v3134_v24 }
 0x88a   : > { %2399 = vmatprep.mubr.msk.f32.mxu0 %vm353_vm2, %v1412_v52 }
 0x88d   : > { %2400 = vmatmul.mubr.msk.f32.gmra.mrb[10].mxu0 %vm353_vm2, %v1413_v9 }
 0x88e   : > { %2410 = vmatprep.mubr.msk.f32.mxu0 %vm353_vm2, %v1703_v58 }
 0x891   : > { %2411 = vmatmul.mubr.msk.f32.vlgmr.msra.gmra.mrb[4].mxu0 %vm353_vm2, %v3131_v22 }
 0x892   : > { %2413 = vmatprep.mubr.msk.f32.mxu0 %vm353_vm2, %v3147_v29 }
 0x895   : > { %2414 = vmatmul.mubr.msk.f32.gmra.mrb[6].mxu0 %vm353_vm2, %v3152_v31 }
 0x896   : > { %2416 = vmatprep.mubr.msk.f32.mxu0 %vm353_vm2, %v1435_v32 }
 0x899   : > { %2417 = vmatmul.mubr.msk.f32.gmra.mrb[8].mxu0 %vm353_vm2, %v1436_v33 }
 0x89a   : > { %2419 = vmatprep.mubr.msk.f32.mxu0 %vm353_vm2, %v1437_v34 }
 0x89d   : > { %2420 = vmatmul.mubr.msk.f32.gmra.mrb[10].mxu0 %vm353_vm2, %v1438_v35 }
 0x964   : > { %v2412_v59 = vpop.f32.mrb[4].mxu0 }
 0x965   : > { %v1805_v60 = vpop.f32.mrb[5].mxu0  ;;  %v1860_v63 = vadd.f32 %v2412_v59, %v2183_v61 }
 0x966   : > { %v1859_v2 = vadd.f32 %v2183_v61, %v1805_v60 }
 0x968   : > { %v2415_v62 = vpop.f32.mrb[6].mxu0 }
 0x969   : > { %v1862_v0 = vadd.f32 %v2415_v62, %v2183_v61  ;;  %v1815_v1 = vpop.f32.mrb[7].mxu0 }
 0x96a   : > { %v1861_v3 = vadd.f32 %v2183_v61, %v1815_v1 }
 0x96b   : > { %v1883_v4 = vcombine.low %v1860_v63, %v1862_v0  ;;  %v1884_v5 = vcombine.high %v1860_v63, %v1862_v0 }
 0x96c   : > { %v1867_v6 = vcombine.low %v1859_v2, %v1861_v3  ;;  %v1868_v8 = vcombine.high %v1859_v2, %v1861_v3  ;;  %v2418_v10 = vpop.f32.mrb[8].mxu0 }
 0x96d   : > { %v1891_v11 = vrot.slane %v1883_v4, %v3033_v28  ;;  %v1898_v13 = vrot.slane %v1884_v5, %v3033_v28  ;;  %v1825_v14 = vpop.f32.mrb[9].mxu0  ;;  %v1864_v21 = vadd.f32 %v2418_v10, %v2183_v61 }
 0x96e   : > { %v1875_v25 = vrot.slane %v1867_v6, %v3033_v28  ;;  %v1882_v15 = vrot.slane %v1868_v8, %v3033_v28  ;;  %v1863_v24 = vadd.f32 %v2183_v61, %v1825_v14 }
 0x970   : > { %v1931_v16 = vcombine.low %v1875_v25, %v1891_v11  ;;  %v1932_v17 = vcombine.high %v1875_v25, %v1891_v11  ;;  %v1947_v18 = vcombine.low %v1882_v15, %v1898_v13  ;;  %v1948_v19 = vcombine.high %v1882_v15, %v1898_v13  ;;  %v2421_v20 = vpop.f32.mrb[10].mxu0 }
 0x971   : > { %v1866_v22 = vadd.f32 %v2421_v20, %v2183_v61  ;;  %v1835_v23 = vpop.f32.mrb[11].mxu0 }
 0x972   : > { %v1865_v29 = vadd.f32 %v2183_v61, %v1835_v23  ;;  %v1939_v40 = vrot.slane %v1931_v16, %v3040_v54  ;;  %v1946_v41 = vrot.slane %v1932_v17, %v3040_v54  ;;  %v1955_v44 = vrot.slane %v1947_v18, %v3040_v54 }
 0x973   : > { %v1915_v26 = vcombine.low %v1864_v21, %v1866_v22  ;;  %v1916_v27 = vcombine.high %v1864_v21, %v1866_v22  ;;  %v1962_v45 = vrot.slane %v1948_v19, %v3040_v54 }
 0x974   : > { %v1899_v32 = vcombine.low %v1863_v24, %v1865_v29  ;;  %v1900_v33 = vcombine.high %v1863_v24, %v1865_v29 }
 0x975   : > { %v1923_v30 = vrot.slane %v1915_v26, %v3033_v28  ;;  %v1930_v31 = vrot.slane %v1916_v27, %v3033_v28 }
 0x976   : > { %v1907_v34 = vrot.slane %v1899_v32, %v3033_v28  ;;  %v1914_v35 = vrot.slane %v1900_v33, %v3033_v28 }
 0x978   : > { %v1963_v36 = vcombine.low %v1907_v34, %v1923_v30  ;;  %v1964_v37 = vcombine.high %v1907_v34, %v1923_v30  ;;  %v1979_v38 = vcombine.low %v1914_v35, %v1930_v31  ;;  %v1980_v39 = vcombine.high %v1914_v35, %v1930_v31 }
 0x97a   : > { %v1971_v42 = vrot.slane %v1963_v36, %v3040_v54  ;;  %v1978_v43 = vrot.slane %v1964_v37, %v3040_v54  ;;  %v1987_v7 = vrot.slane %v1979_v38, %v3040_v54  ;;  %v1994_v28 = vrot.slane %v1980_v39, %v3040_v54 }
 0x97c   : > { %v1995_v46 = vcombine.low %v1939_v40, %v1971_v42  ;;  %v1996_v47 = vcombine.high %v1939_v40, %v1971_v42  ;;  %v1997_v48 = vcombine.low %v1946_v41, %v1978_v43  ;;  %v1998_v49 = vcombine.high %v1946_v41, %v1978_v43 }
 0x97d   : > { %v1999_v50 = vcombine.low %v1955_v44, %v1987_v7  ;;  %v2000_v54 = vcombine.high %v1955_v44, %v1987_v7  ;;  %v2001_v51 = vcombine.low %v1962_v45, %v1994_v28  ;;  %v2002_v9 = vcombine.high %v1962_v45, %v1994_v28 }
 0x97e   : > { %2003 = vst.msk [vmem:[%s2976_s24] sm:$0xff] %vm353_vm2, %v1995_v46  ;;  %2004 = vst.msk [vmem:[%s2976_s24 + $0x8] sm:$0xff] %vm353_vm2, %v1996_v47 }
 0x97f   : > { %2005 = vst.msk [vmem:[%s2976_s24 + $0x10] sm:$0xff] %vm353_vm2, %v1997_v48  ;;  %2006 = vst.msk [vmem:[%s2976_s24 + $0x18] sm:$0xff] %vm353_vm2, %v1998_v49 }
 0x980   : > { %2007 = vst.msk [vmem:[%s2976_s24 + $0x20] sm:$0xff] %vm353_vm2, %v1999_v50  ;;  %2008 = vst.msk [vmem:[%s2976_s24 + $0x28] sm:$0xff] %vm353_vm2, %v2000_v54 }
 0x981   : > { %2009 = vst.msk [vmem:[%s2976_s24 + $0x30] sm:$0xff] %vm353_vm2, %v2001_v51  ;;  %2010 = vst.msk [vmem:[%s2976_s24 + $0x38] sm:$0xff] %vm353_vm2, %v2002_v9 }
 0x982   : > { %2674 = shalt.err (!%p2671_p0)
}
 0x983   : > { %s2675_s24 = scalar_lea.hbm %s3219_s13, 1024  ;;  %s2679_s9 = scalar_lea.hbm %s3293_s7, 2048 }
 0x984   : > { %p2676_p2 = scmp.ne.s32.totalorder %s3219_s13, %s2675_s24  ;;  %p2680_p5 = scmp.lt.u32.totalorder %s3219_s13, %s3293_s7 }
 0x985   : > { %p2681_p10 = scmp.lt.u32.totalorder %s2679_s9, %s2675_s24  ;;  %p2683_p11 = scmp.lt.u32.totalorder %s2675_s24, %s3219_s13 }
 0x986   : > { %p2677_p7 = pnand %p2676_p2, %p3323_p13 }
 0x987   : > { %p2682_p9 = por %p2681_p10, %p2680_p5 }
 0x988   : > { %p2678_p12 = pneg %p2677_p7 }
 0x989   : > { %p2684_p4 = por %p2683_p11, %p2682_p9 }
 0x98b   : > { %p2685_p1 = pnand %p2684_p4, %p2678_p12 }
 0x98d   : > { %2688 = shalt.err (!%p2685_p1)
}
 0x98e   : > { %s2761_s16 = smov 128   ;;  %s2762_s27 = smov 256  }
 0x98f   : > { %s2763_s21 = smov 8  }
 0x990   : > { %2504 = dma.vmem_to_hbm [thread:$0]  (%p3323_p13), %s3221_s29, 1024, %s3219_s13, %s2012_s15, %s2761_s16, %s2762_s27, %s2763_s21  }
 0x991 PF: > { %s3324_s17 = sld [smem:[#allocation16_spill]]  ;;  %s3325_s30 = sld [smem:[#allocation18_spill]] }
 0x992   : > { %s3326_s8 = sld [smem:[#allocation17_spill]] }
 0x997   : > { %s2042_s11 = sand.u32 1, %s3324_s17   ;;  %p3327_p3 = scmp.ne.s32.totalorder %s3325_s30, 0 }
 0x998   : > { %p3328_p6 = scmp.ge.s32.totalorder %s3326_s8, 2  ;;  %s2043_s24 = scalar_lea.sflag [#allocation9], %s2042_s11 }
 0x99a   : > { %p2515_p8 = pnand %p3328_p6, %p3327_p3 }
 0x99c   : > { %2722 = dma.done.wait (!%p2515_p8), %s2043_s24, 1024  }
 0x99d   : > { %2724 = vsyncadd (!%p2515_p8), %s2043_s24, 4294966272  ;;  %s24_s29 = sadd.s32 1, %s3326_s8   ;;  %s3329_s24 = smov %s2731_s25 }
 0x99e   : > { %p21_p0 = scmp.ge.s32.totalorder %s24_s29, 4   ;;  %s3330_s25 = smov %s2735_s26 }
 0x99f   : > { %s3331_s26 = smov %s2925_s23  ;;  %s3332_s27 = smov %s2743_s28 }
 0x9a0   : > { %s3333_s28 = smov %s3335_s19  ;;  %23 = sbr.rel (!%p21_p0) target bundleno = 7 (0x7), region = 117 }
 0x9a7   :  { %2048 = vsyncpa [#allocation8], 1 }
 0x9a8   :  { %2050 = vsyncpa [#allocation8 + $0x1], 1 }
 0x9a9   :  { %2051 = vsyncpa [#allocation11], 1 }
 0x9aa   :  { %2052 = vsyncpa [#allocation9], 1 }
 0x9ab   :  { %2054 = vsyncpa [#allocation9 + $0x1], 1 }

</bundles_post_ra>
